<compile_context>
chip_gen: v5e
topology: v5e:2x2
jax: 0.10.0
libtpu: 0.0.40
codegen_flags: <defaults>
</compile_context>

<pallas_src>
import functools
import math

import jax
import jax.numpy as jnp
from jax import lax
from jax.experimental import pallas as pl
from jax.experimental.pallas import tpu as pltpu

_LANE = 128
_SUBLANE = 8


def _round_up(n, m):
    return ((n + m - 1) // m) * m


# ---------------------------------------------------------------------------
# Pallas kernel: fused 3-layer MLP discriminator (one block of batch rows)
# ---------------------------------------------------------------------------
def _discriminator_kernel(x_ref, w1_ref, b1_ref, w2_ref, b2_ref, w3_ref, b3_ref,
                          o_ref):
    # Layer 1: Linear(n1 -> n2p) + ReLU. x keeps its true 48-wide feature dim;
    # W1's padded output lanes are zero, so relu(0 + 0) == 0 keeps things exact.
    h1 = jnp.dot(x_ref[...], w1_ref[...], preferred_element_type=jnp.float32)
    h1 = jnp.maximum(h1 + b1_ref[...], 0.0)

    # Layer 2: Linear(n2p -> n3p) + ReLU (padded lanes stay exactly zero).
    h2 = jnp.dot(h1, w2_ref[...], preferred_element_type=jnp.float32)
    h2 = jnp.maximum(h2 + b2_ref[...], 0.0)

    # Layer 3: Linear(n3 -> 1) as an nt-matmul producing a lane-dense row:
    #   (1, n3p) x (block_b, n3p) contracted on n3p -> (1, block_b).
    logits = lax.dot_general(
        w3_ref[...], h2,
        dimension_numbers=(((1,), (1,)), ((), ())),
        preferred_element_type=jnp.float32,
    )
    logits = logits + b3_ref[0, 0]          # scalar bias from SMEM

    # Sigmoid: exp on the EUP; exact reciprocal keeps bit-level agreement.
    o_ref[...] = pl.reciprocal(1.0 + jnp.exp(-logits), approx=False)


# ---------------------------------------------------------------------------
# Wrapper: round batch up to the row-block size, grid over row blocks,
# slice padding off and restore the (batch, 1) module output shape.
# ---------------------------------------------------------------------------
@functools.partial(jax.jit, static_argnames=("block_rows",))
def discriminator_forward(x, padded_params, block_rows=1024):
    """x: [batch, n1] float32. padded_params: output of pad_params()."""
    w1, b1 = padded_params["w1"], padded_params["b1"]
    w2, b2 = padded_params["w2"], padded_params["b2"]
    w3, b3 = padded_params["w3"], padded_params["b3"]

    batch, n1 = x.shape

    # Row-block size: multiple of 128 lanes so the (1, block_b) output tile is
    # lane-dense/unmasked and the (block_b, n1) input tile satisfies (8, 128).
    block_b = max(_LANE, min(_round_up(block_rows, _LANE), _round_up(batch, _LANE)))
    batch_pad = _round_up(batch, block_b)
    num_blocks = batch_pad // block_b

    # Only batch-dim padding; feature dim stays at its true width (n1).
    x_p = jnp.pad(x, ((0, batch_pad - batch), (0, 0))) if batch_pad != batch else x

    resident = lambda i: (0, 0)  # same block every step -> DMA'd once, stays in VMEM

    out = pl.pallas_call(
        _discriminator_kernel,
        out_shape=jax.ShapeDtypeStruct((1, batch_pad), jnp.float32),
        grid=(num_blocks,),
        in_specs=[
            pl.BlockSpec((block_b, n1), lambda i: (i, 0)),       # x row block (un-padded lanes)
            pl.BlockSpec(w1.shape, resident),                    # W1 (n1, n2p), resident
            pl.BlockSpec(b1.shape, resident),                    # b1 (1, n2p), resident
            pl.BlockSpec(w2.shape, resident),                    # W2 (n2p, n3p), resident
            pl.BlockSpec(b2.shape, resident),                    # b2 (1, n3p), resident
            pl.BlockSpec(w3.shape, resident),                    # w3 row (1, n3p), resident
            pl.BlockSpec(memory_space=pltpu.MemorySpace.SMEM),   # b3 scalar
        ],
        out_specs=pl.BlockSpec((1, block_b), lambda i: (0, i)),  # lane-dense output row
        compiler_params=pltpu.CompilerParams(
            dimension_semantics=("parallel",),  # shard row blocks across TCs
        ),
    )(x_p, w1, b1, w2, b2, w3, b3)

    # Drop batch padding, restore the module's (batch, 1) output shape.
    return out[0, :batch].reshape(batch, 1)


# ---------------------------------------------------------------------------
# Parameter init (mimics torch.nn.Linear default: U(-1/sqrt(fan_in), ...))
# and one-time zero-padding of parameters to lane-dense shapes.
# ---------------------------------------------------------------------------
def init_params(key, n1, n2, n3):
    def linear_init(k, fan_in, fan_out):
        kw, kb = jax.random.split(k)
        bound = 1.0 / math.sqrt(fan_in)
        # stored as [in, out] (i.e. torch weight [out, in] transposed)
        w = jax.random.uniform(kw, (fan_in, fan_out), jnp.float32, -bound, bound)
        b = jax.random.uniform(kb, (1, fan_out), jnp.float32, -bound, bound)
        return w, b

    k1, k2, k3 = jax.random.split(key, 3)
    w1, b1 = linear_init(k1, n1, n2)
    w2, b2 = linear_init(k2, n2, n3)
    w3, b3 = linear_init(k3, n3, 1)
    return {"w1": w1, "b1": b1, "w2": w2, "b2": b2, "w3": w3, "b3": b3}


def pad_params(params, n1, n2, n3):
    """Zero-pad parameter OUTPUT dims to lane width; W1 keeps its true K dim."""
    n2p, n3p = _round_up(n2, _LANE), _round_up(n3, _LANE)

    def pad2(a, rows, cols):
        return jnp.zeros((rows, cols), jnp.float32).at[:a.shape[0], :a.shape[1]].set(a)

    return {
        "w1": pad2(params["w1"], n1, n2p),   # (n1, n2p): K un-padded, x streams at 48 lanes
        "b1": pad2(params["b1"], 1, n2p),
        "w2": pad2(params["w2"], n2p, n3p),
        "b2": pad2(params["b2"], 1, n3p),
        # final-layer weight stored as a (1, n3p) row for the nt-matmul
        "w3": pad2(params["w3"].T, 1, n3p),
        "b3": params["b3"].reshape(1, 1).astype(jnp.float32),
    }


# Pure-JAX reference for correctness checking
def reference_forward(x, p):
    h1 = jnp.maximum(x @ p["w1"] + p["b1"], 0.0)
    h2 = jnp.maximum(h1 @ p["w2"] + p["b2"], 0.0)
    return jax.nn.sigmoid(h2 @ p["w3"] + p["b3"])


if __name__ == "__main__":
    # Module-consistent config: NAtom=16, increment=8  =>  n1=48, n2=40, n3=24.
    NAtom = 16
    increment = 8
    batch = 1024                  # small, but enough rows to exercise the grid
    n1 = NAtom * 3                # 48
    n2 = n1 - increment           # 40
    n3 = n1 - increment * 3       # 24

    key = jax.random.PRNGKey(0)
    kx, kp = jax.random.split(key)
    x = jax.random.normal(kx, (batch, n1), jnp.float32)
    params = init_params(kp, n1, n2, n3)
    padded = pad_params(params, n1, n2, n3)

    # block_rows=256 -> 4 row blocks: exercises pipelining and megacore sharding.
    out = discriminator_forward(x, padded, block_rows=256)
    out = jax.block_until_ready(out)

    ref = reference_forward(x, params)
    assert out.shape == (batch, 1)
    assert jnp.allclose(out, ref, atol=1e-5, rtol=1e-5), "mismatch vs reference"

    print("KERNEL_OK")
</pallas_src>

<mosaic_0001>
module attributes {stable_mosaic.version = 11 : i64} {
  func.func @_discriminator_kernel(%arg0: i32, %arg1: memref<256x48xf32, #tpu.memory_space<vmem>>, %arg2: memref<48x128xf32, #tpu.memory_space<vmem>>, %arg3: memref<1x128xf32, #tpu.memory_space<vmem>>, %arg4: memref<128x128xf32, #tpu.memory_space<vmem>>, %arg5: memref<1x128xf32, #tpu.memory_space<vmem>>, %arg6: memref<1x128xf32, #tpu.memory_space<vmem>>, %arg7: memref<1x1xf32, #tpu.memory_space<smem>>, %arg8: memref<1x256xf32, #tpu.memory_space<vmem>>) attributes {dimension_semantics = [#tpu.dimension_semantics<parallel>], iteration_bounds = array<i64: 4>, scalar_prefetch = 0 : i64, scratch_operands = 0 : i64, tpu.core_type = #tpu.core_type<tc>, window_params = [{transform_indices = @transform_0, window_bounds = array<i64: 256, 48>}, {pipeline_mode = #tpu.pipeline_mode<synchronous>, transform_indices = @transform_1, window_bounds = array<i64: 48, 128>}, {pipeline_mode = #tpu.pipeline_mode<synchronous>, transform_indices = @transform_2, window_bounds = array<i64: 1, 128>}, {pipeline_mode = #tpu.pipeline_mode<synchronous>, transform_indices = @transform_3, window_bounds = array<i64: 128, 128>}, {pipeline_mode = #tpu.pipeline_mode<synchronous>, transform_indices = @transform_4, window_bounds = array<i64: 1, 128>}, {pipeline_mode = #tpu.pipeline_mode<synchronous>, transform_indices = @transform_5, window_bounds = array<i64: 1, 128>}, {transform_indices = @transform_6, window_bounds = array<i64: 1, 1>}, {transform_indices = @transform_7, window_bounds = array<i64: 1, 256>}]} {
    %c0 = arith.constant 0 : index
    %c0_0 = arith.constant 0 : index
    %0 = vector.load %arg1[%c0, %c0_0] : memref<256x48xf32, #tpu.memory_space<vmem>>, vector<256x48xf32>
    %c0_1 = arith.constant 0 : index
    %c0_2 = arith.constant 0 : index
    %1 = vector.load %arg2[%c0_1, %c0_2] : memref<48x128xf32, #tpu.memory_space<vmem>>, vector<48x128xf32>
    %cst = arith.constant dense<0.000000e+00> : vector<256x128xf32>
    %2 = tpu.matmul %0, %1, %cst {dimension_numbers = #tpu.dot_dimension_numbers<[1], [0], [0], [1], [0, 0, 1, 1], [], []>} : vector<256x48xf32>, vector<48x128xf32>, vector<256x128xf32> -> vector<256x128xf32>
    %c0_3 = arith.constant 0 : index
    %c0_4 = arith.constant 0 : index
    %3 = vector.load %arg3[%c0_3, %c0_4] : memref<1x128xf32, #tpu.memory_space<vmem>>, vector<1x128xf32>
    %4 = vector.broadcast %3 : vector<1x128xf32> to vector<256x128xf32>
    %5 = arith.addf %2, %4 : vector<256x128xf32>
    %cst_5 = arith.constant 0.000000e+00 : f32
    %6 = vector.broadcast %cst_5 : f32 to vector<256x128xf32>
    %7 = arith.maximumf %5, %6 : vector<256x128xf32>
    %c0_6 = arith.constant 0 : index
    %c0_7 = arith.constant 0 : index
    %8 = vector.load %arg4[%c0_6, %c0_7] : memref<128x128xf32, #tpu.memory_space<vmem>>, vector<128x128xf32>
    %cst_8 = arith.constant dense<0.000000e+00> : vector<256x128xf32>
    %9 = tpu.matmul %7, %8, %cst_8 {dimension_numbers = #tpu.dot_dimension_numbers<[1], [0], [0], [1], [0, 0, 1, 1], [], []>} : vector<256x128xf32>, vector<128x128xf32>, vector<256x128xf32> -> vector<256x128xf32>
    %c0_9 = arith.constant 0 : index
    %c0_10 = arith.constant 0 : index
    %10 = vector.load %arg5[%c0_9, %c0_10] : memref<1x128xf32, #tpu.memory_space<vmem>>, vector<1x128xf32>
    %11 = vector.broadcast %10 : vector<1x128xf32> to vector<256x128xf32>
    %12 = arith.addf %9, %11 : vector<256x128xf32>
    %cst_11 = arith.constant 0.000000e+00 : f32
    %13 = vector.broadcast %cst_11 : f32 to vector<256x128xf32>
    %14 = arith.maximumf %12, %13 : vector<256x128xf32>
    %c0_12 = arith.constant 0 : index
    %c0_13 = arith.constant 0 : index
    %15 = vector.load %arg6[%c0_12, %c0_13] : memref<1x128xf32, #tpu.memory_space<vmem>>, vector<1x128xf32>
    %cst_14 = arith.constant dense<0.000000e+00> : vector<1x256xf32>
    %16 = tpu.matmul %15, %14, %cst_14 {dimension_numbers = #tpu.dot_dimension_numbers<[1], [1], [0], [0], [0, 0, 1, 0], [], []>} : vector<1x128xf32>, vector<256x128xf32>, vector<1x256xf32> -> vector<1x256xf32>
    %c0_15 = arith.constant 0 : index
    %c0_16 = arith.constant 0 : index
    %17 = memref.load %arg7[%c0_15, %c0_16] : memref<1x1xf32, #tpu.memory_space<smem>>
    %18 = vector.broadcast %17 : f32 to vector<1x256xf32>
    %19 = arith.addf %16, %18 : vector<1x256xf32>
    %cst_17 = arith.constant 0.000000e+00 : f32
    %20 = vector.broadcast %cst_17 : f32 to vector<1x256xf32>
    %21 = arith.subf %20, %19 : vector<1x256xf32>
    %22 = math.exp %21 : vector<1x256xf32>
    %cst_18 = arith.constant 1.000000e+00 : f32
    %23 = vector.broadcast %cst_18 : f32 to vector<1x256xf32>
    %24 = arith.addf %23, %22 : vector<1x256xf32>
    %25 = tpu.reciprocal %24 : vector<1x256xf32> -> vector<1x256xf32>
    %c0_19 = arith.constant 0 : index
    %c0_20 = arith.constant 0 : index
    %26 = vector.load %arg8[%c0_19, %c0_20] : memref<1x256xf32, #tpu.memory_space<vmem>>, vector<1x256xf32>
    tpu.vector_store %arg8[%c0_19, %c0_20], %25 {strides = array<i32>} : memref<1x256xf32, #tpu.memory_space<vmem>>, vector<1x256xf32>,
    return
  }
  func.func @transform_0(%arg0: i32) -> (i32, i32) {
    %c0_i32 = arith.constant 0 : i32
    %c0_i32_0 = arith.constant 0 : i32
    return %arg0, %c0_i32 : i32, i32
  }
  func.func @transform_1(%arg0: i32) -> (i32, i32) {
    %c0_i32 = arith.constant 0 : i32
    %c0_i32_0 = arith.constant 0 : i32
    %c0_i32_1 = arith.constant 0 : i32
    return %c0_i32, %c0_i32_0 : i32, i32
  }
  func.func @transform_2(%arg0: i32) -> (i32, i32) {
    %c0_i32 = arith.constant 0 : i32
    %c0_i32_0 = arith.constant 0 : i32
    %c0_i32_1 = arith.constant 0 : i32
    return %c0_i32, %c0_i32_0 : i32, i32
  }
  func.func @transform_3(%arg0: i32) -> (i32, i32) {
    %c0_i32 = arith.constant 0 : i32
    %c0_i32_0 = arith.constant 0 : i32
    %c0_i32_1 = arith.constant 0 : i32
    return %c0_i32, %c0_i32_0 : i32, i32
  }
  func.func @transform_4(%arg0: i32) -> (i32, i32) {
    %c0_i32 = arith.constant 0 : i32
    %c0_i32_0 = arith.constant 0 : i32
    %c0_i32_1 = arith.constant 0 : i32
    return %c0_i32, %c0_i32_0 : i32, i32
  }
  func.func @transform_5(%arg0: i32) -> (i32, i32) {
    %c0_i32 = arith.constant 0 : i32
    %c0_i32_0 = arith.constant 0 : i32
    %c0_i32_1 = arith.constant 0 : i32
    return %c0_i32, %c0_i32_0 : i32, i32
  }
  func.func @transform_6(%arg0: i32) -> (i32, i32) {
    %c0_i32 = arith.constant 0 : i32
    %c0_i32_0 = arith.constant 0 : i32
    %c0_i32_1 = arith.constant 0 : i32
    return %c0_i32, %c0_i32_0 : i32, i32
  }
  func.func @transform_7(%arg0: i32) -> (i32, i32) {
    %c0_i32 = arith.constant 0 : i32
    %c0_i32_0 = arith.constant 0 : i32
    return %c0_i32, %arg0 : i32, i32
  }
}

</mosaic_0001>

<bundles_post_ra>
// kernel: discriminator_forward.1
= control target key start
LH: loop header
LB: loop body
LE: loop exit
PB: predicated region body
PF: predicated region fallthrough
CT: control target
= control target key end

     0   :  { %s1455_s0 = inlined_call_operand.vmem [shape: f32[1024,48], index: 0, kind: input, shape index: {}]   ;;  %s1456_s1 = inlined_call_operand.vmem [shape: f32[48,128], index: 1, kind: input, shape index: {}]   ;;  %s1457_s2 = inlined_call_operand.vmem [shape: f32[1,128], index: 2, kind: input, shape index: {}]   ;;  %s1458_s3 = inlined_call_operand.vmem [shape: f32[128,128], index: 3, kind: input, shape index: {}]   ;;  %s1459_s4 = inlined_call_operand.vmem [shape: f32[1,128], index: 4, kind: input, shape index: {}]   ;;  %s1460_s5 = inlined_call_operand.vmem [shape: f32[1,128], index: 5, kind: input, shape index: {}]   ;;  %s1461_s6 = inlined_call_operand.<no memory space> [shape: f32[1,1], index: 6, kind: input, shape index: {}]   ;;  %s1462_s7 = inlined_call_operand.hbm [shape: f32[1,1024], index: 7, kind: output, shape index: {}]  }
   0x1   :  { %12 = sst [smem:[#allocation2]] %s1461_s6 }
   0x2   :  { %13 = vsyncpa [#allocation4], 0 }
   0x3   :  { %15 = vsyncpa [#allocation4 + $0x1], 0  ;;  %s1116_s26 = smov 0   ;;  %s1118_s27 = smov 0  }
   0x4   :  { %s1120_s28 = smov 0   ;;  %s1122_s29 = smov 0  }
   0x5 LB: > { %s1137_s6 = sadd.s32 4294967295, %s1071_s29   ;;  %s895_s30 = sadd.s32 4294967294, %s1071_s29   ;;  %s1071_s29 = sphi %s1122_s29, %s1470_s29   ;;  %s1067_s28 = sphi %s1120_s28, %s1469_s28   ;;  %s1063_s27 = sphi %s1118_s27, %s1468_s27   ;;  %s1059_s26 = sphi %s1116_s26, %s1467_s26  }
   0x6   : > { %s1141_s8 = sadd.s32 1, %s1071_s29   ;;  %s180_s9 = sadd.s32 1, %s1067_s28 }
   0x7   : > { %s177_s10 = ssub.s32 %s1071_s29, %s1141_s8  ;;  %p190_p0 = scmp.ne.s32.totalorder %s1067_s28, %s1063_s27 }
   0x8   : > { %p178_p1 = scmp.eq.s32.totalorder %s177_s10, 0  ;;  %p191_p2 = scmp.eq.s32.totalorder %s1137_s6, 3 }
   0x9   : > { %p196_p3 = scmp.ne.s32.totalorder %s1063_s27, %s1059_s26  ;;  %p197_p4 = scmp.eq.s32.totalorder %s895_s30, 3 }
   0xa   : > { %s1152_s11 = scalar_select %p178_p1, %s1067_s28, %s180_s9  }
   0xb   : > { %p1154_p5 = por %p191_p2, %p190_p0  ;;  %p1158_p6 = por %p197_p4, %p196_p3 }
   0xc   : > { %p898_p7 = scmp.ge.s32.totalorder %s1071_s29, 1  ;;  %p242_p8 = scmp.lt.s32.totalorder %s1071_s29, 5 }
   0xe   : > { %p243_p9 = pnand %p898_p7, %p242_p8 }
   0xf   : > { %s900_s18 = sshll.u32 (!%p243_p9), %s1137_s6, 5  ;;  %s731_s25 = sld [smem:[#allocation2]] (!%p243_p9) }
  0x10   : > { %246 = sbr.rel (%p243_p9) target bundleno = 780 (0x30c), region = 48  ;;  %p275_p10 = scmp.lt.s32.totalorder (!%p243_p9), %s900_s18, 127 }
  0x11   : > { %s271_s30 = sand.u32 (!%p243_p9), 1, %s1063_s27   ;;  %s935_s14 = sshll.u32 (!%p243_p9), %s1137_s6, 1 }
  0x12   : > { %s1413_s9 = sshll.u32 (!%p243_p9), %s271_s30, 1  ;;  %s831_s17 = scalar_lea.hbm (!%p243_p9), %s1462_s7, %s935_s14 }
  0x13   : > { %s273_s6 = scalar_lea.vmem (!%p243_p9), [#allocation3], %s1413_s9  ;;  %s835_s19 = sshll.u32 (!%p243_p9), %s831_s17, 4  ;;  %s836_s19 = int_to_ptr.hbm [resolvable:$true] %s835_s19 }
  0x14   : > { %s821_s20 = scalar_lea.sflag (!%p243_p9), [#allocation4], %s271_s30  ;;  %s1023_s21 = sshra.s32 (!%p243_p9), %s836_s19, 4  ;;  %s1024_s21 = int_to_ptr.hbm [resolvable:$true] %s1023_s21 }
  0x15   : > { %v318_v0 = vld [vmem:[%s1456_s1 + $0x28] sm:$0xff]  ;;  %v317_v1 = vld [vmem:[%s1456_s1 + $0x20] sm:$0xff]  ;;  %v316_v2 = vld [vmem:[%s1456_s1 + $0x18] sm:$0xff]  ;;  %s1472_s18 = smov (!%p275_p10, %s900_s18), 127  ;;  %vm323_vm0 = vcmask 392192   ;;  %vm812_vm9 = vcmask 1040384   ;;  %p1030_p0 = scmp.lt.s32.totalorder %s1024_s21, %s1462_s7 }
  0x16   : > { %430 = vmatpush.msra.mxu0 %v318_v0  ;;  %938 = vmatpush.msra.mxu3 %v318_v0  ;;  %v315_v3 = vld [vmem:[%s1456_s1 + $0x10] sm:$0xff]  ;;  %s901_s23 = sshll.u32 %s1472_s18, 3  ;;  %v314_v4 = vld [vmem:[%s1456_s1 + $0x8] sm:$0xff]  ;;  %v313_v5 = vld [vmem:[%s1456_s1] sm:$0xff]  ;;  %s833_s18 = sshll.u32 %s273_s6, 4  ;;  %s834_s18 = int_to_ptr.vmem [resolvable:$true] %s833_s18 }
  0x17   : > { %s1183_s10 = scalar_lea.vmem %s1455_s0, %s901_s23  ;;  %v580_v15 = vld [vmem:[%s1458_s3 + $0x78] sm:$0xff]  ;;  %v579_v16 = vld [vmem:[%s1458_s3 + $0x70] sm:$0xff]  ;;  %v578_v17 = vld [vmem:[%s1458_s3 + $0x68] sm:$0xff]  ;;  %s1029_s24 = scalar_lea.hbm %s1462_s7, 8 }
  0x18   : > { %431 = vmatpush.msra.mxu0 %v317_v1  ;;  %939 = vmatpush.msra.mxu3 %v317_v1  ;;  %v281_v6 = vld [vmem:[%s1183_s10] sm:$0xff]  ;;  %v282_v7 = vld [vmem:[%s1183_s10 + $0x8] sm:$0xff]  ;;  %v283_v8 = vld [vmem:[%s1183_s10 + $0x10] sm:$0xff] }
  0x19   : > { %v284_v9 = vld [vmem:[%s1183_s10 + $0x18] sm:$0xff]  ;;  %v285_v10 = vld [vmem:[%s1183_s10 + $0x20] sm:$0xff]  ;;  %v286_v11 = vld [vmem:[%s1183_s10 + $0x28] sm:$0xff]  ;;  %585 = vmatpush.msra.mxu1 %v580_v15  ;;  %944 = vmatpush.msra.mxu2 %v580_v15 }
  0x1a   : > { %432 = vmatpush.msra.mxu0 %v316_v2  ;;  %940 = vmatpush.msra.mxu3 %v316_v2  ;;  %v287_v12 = vld [vmem:[%s1183_s10 + $0x30] sm:$0xff]  ;;  %v288_v13 = vld [vmem:[%s1183_s10 + $0x38] sm:$0xff]  ;;  %v289_v14 = vld [vmem:[%s1183_s10 + $0x40] sm:$0xff] }
  0x1b   : > { %586 = vmatpush.msra.mxu1 %v579_v16  ;;  %945 = vmatpush.msra.mxu2 %v579_v16  ;;  %v290_v18 = vld [vmem:[%s1183_s10 + $0x48] sm:$0xff]  ;;  %v577_v19 = vld [vmem:[%s1458_s3 + $0x60] sm:$0xff]  ;;  %v576_v20 = vld [vmem:[%s1458_s3 + $0x58] sm:$0xff] }
  0x1c   : > { %433 = vmatpush.msra.mxu0 %v315_v3  ;;  %941 = vmatpush.msra.mxu3 %v315_v3  ;;  %v575_v21 = vld [vmem:[%s1458_s3 + $0x50] sm:$0xff]  ;;  %v574_v22 = vld [vmem:[%s1458_s3 + $0x48] sm:$0xff]  ;;  %v573_v24 = vld [vmem:[%s1458_s3 + $0x40] sm:$0xff] }
  0x1d   : > { %587 = vmatpush.msra.mxu1 %v578_v17  ;;  %946 = vmatpush.msra.mxu2 %v578_v17  ;;  %v291_v23 = vld [vmem:[%s1183_s10 + $0x50] sm:$0xff]  ;;  %v572_v25 = vld [vmem:[%s1458_s3 + $0x38] sm:$0xff]  ;;  %v570_v27 = vld [vmem:[%s1458_s3 + $0x28] sm:$0xff] }
  0x1e   : > { %434 = vmatpush.msra.mxu0 %v314_v4  ;;  %942 = vmatpush.msra.mxu3 %v314_v4  ;;  %v571_v26 = vld [vmem:[%s1458_s3 + $0x30] sm:$0xff]  ;;  %v292_v28 = vld [vmem:[%s1183_s10 + $0x58] sm:$0xff]  ;;  %v569_v29 = vld [vmem:[%s1458_s3 + $0x20] sm:$0xff] }
  0x1f   : > { %588 = vmatpush.msra.mxu1 %v577_v19  ;;  %947 = vmatpush.msra.mxu2 %v577_v19  ;;  %v568_v30 = vld [vmem:[%s1458_s3 + $0x18] sm:$0xff]  ;;  %v567_v31 = vld [vmem:[%s1458_s3 + $0x10] sm:$0xff]  ;;  %v293_v32 = vld [vmem:[%s1183_s10 + $0x60] sm:$0xff] }
  0x20   : > { %435 = vmatpush.msra.mxu0 %v313_v5  ;;  %943 = vmatpush.msra.mxu3 %v313_v5  ;;  %v566_v33 = vld [vmem:[%s1458_s3 + $0x8] sm:$0xff]  ;;  %v565_v34 = vld [vmem:[%s1458_s3] sm:$0xff]  ;;  %v299_v36 = vld [vmem:[%s1183_s10 + $0x90] sm:$0xff] }
  0x21   : > { %902 = vmatmul.msk.f32.vlgmr.msra.gmra.mxu0 %vm323_vm0, %v281_v6  ;;  %589 = vmatpush.msra.mxu1 %v576_v20  ;;  %v294_v35 = vld [vmem:[%s1183_s10 + $0x68] sm:$0xff]  ;;  %v295_v37 = vld [vmem:[%s1183_s10 + $0x70] sm:$0xff]  ;;  %v300_v38 = vld [vmem:[%s1183_s10 + $0x98] sm:$0xff] }
  0x22   : > { %948 = vmatpush.msra.mxu2 %v576_v20  ;;  %920 = vmatmul.msk.f32.vlgmr.msra.gmra.mxu3 %vm323_vm0, %v299_v36  ;;  %v296_v39 = vld [vmem:[%s1183_s10 + $0x78] sm:$0xff]  ;;  %v301_v40 = vld [vmem:[%s1183_s10 + $0xa0] sm:$0xff]  ;;  %v302_v46 = vld [vmem:[%s1183_s10 + $0xa8] sm:$0xff] }
  0x23   : > { %590 = vmatpush.msra.mxu1 %v575_v21  ;;  %v1277_v41 = vld [vmem:[%s1457_s2] ss:$0 sm:$0xff]  ;;  %v298_v48 = vld [vmem:[%s1183_s10 + $0x88] sm:$0xff]  ;;  %v303_v51 = vld [vmem:[%s1183_s10 + $0xb0] sm:$0xff] }
  0x24   : > { %949 = vmatpush.msra.mxu2 %v575_v21  ;;  %v297_v43 = vld [vmem:[%s1183_s10 + $0x80] sm:$0xff]  ;;  %v304_v55 = vld [vmem:[%s1183_s10 + $0xb8] sm:$0xff]  ;;  %v306_v63 = vld [vmem:[%s1183_s10 + $0xc8] sm:$0xff] }
  0x25   : > { %591 = vmatpush.msra.mxu1 %v574_v22  ;;  %v305_v59 = vld [vmem:[%s1183_s10 + $0xc0] sm:$0xff]  ;;  %v307_v3 = vld [vmem:[%s1183_s10 + $0xd0] sm:$0xff]  ;;  %v310_v15 = vld [vmem:[%s1183_s10 + $0xe8] sm:$0xff] }
  0x26   : > { %950 = vmatpush.msra.mxu2 %v574_v22  ;;  %v311_v19 = vld [vmem:[%s1183_s10 + $0xf0] sm:$0xff] }
  0x27   : > { %592 = vmatpush.msra.mxu1 %v573_v24 }
  0x28   : > { %951 = vmatpush.msra.mxu2 %v573_v24 }
  0x29   : > { %903 = vmatmul.msk.f32.gmra.mxu0 %vm323_vm0, %v282_v7  ;;  %593 = vmatpush.msra.mxu1 %v572_v25  ;;  %v308_v7 = vld [vmem:[%s1183_s10 + $0xd8] sm:$0xff] }
  0x2a   : > { %952 = vmatpush.msra.mxu2 %v572_v25  ;;  %921 = vmatmul.msk.f32.gmra.mxu3 %vm323_vm0, %v300_v38 }
  0x2b   : > { %594 = vmatpush.msra.mxu1 %v571_v26 }
  0x2c   : > { %953 = vmatpush.msra.mxu2 %v571_v26 }
  0x2d   : > { %595 = vmatpush.msra.mxu1 %v570_v27 }
  0x2e   : > { %954 = vmatpush.msra.mxu2 %v570_v27 }
  0x2f   : > { %596 = vmatpush.msra.mxu1 %v569_v29 }
  0x30   : > { %955 = vmatpush.msra.mxu2 %v569_v29 }
  0x31   : > { %904 = vmatmul.msk.f32.gmra.mxu0 %vm323_vm0, %v283_v8  ;;  %597 = vmatpush.msra.mxu1 %v568_v30 }
  0x32   : > { %956 = vmatpush.msra.mxu2 %v568_v30  ;;  %922 = vmatmul.msk.f32.gmra.mxu3 %vm323_vm0, %v301_v40 }
  0x33   : > { %598 = vmatpush.msra.mxu1 %v567_v31 }
  0x34   : > { %957 = vmatpush.msra.mxu2 %v567_v31 }
  0x35   : > { %599 = vmatpush.msra.mxu1 %v566_v33 }
  0x36   : > { %958 = vmatpush.msra.mxu2 %v566_v33 }
  0x37   : > { %600 = vmatpush.msra.mxu1 %v565_v34 }
  0x38   : > { %959 = vmatpush.msra.mxu2 %v565_v34 }
  0x39   : > { %905 = vmatmul.msk.f32.gmra.mxu0 %vm323_vm0, %v284_v9 }
  0x3a   : > { %923 = vmatmul.msk.f32.gmra.mxu3 %vm323_vm0, %v302_v46 }
  0x41   : > { %906 = vmatmul.msk.f32.gmra.mxu0 %vm323_vm0, %v285_v10 }
  0x42   : > { %924 = vmatmul.msk.f32.gmra.mxu3 %vm323_vm0, %v303_v51 }
  0x49   : > { %907 = vmatmul.msk.f32.gmra.mxu0 %vm323_vm0, %v286_v11  ;;  %v309_v11 = vld [vmem:[%s1183_s10 + $0xe0] sm:$0xff] }
  0x4a   : > { %925 = vmatmul.msk.f32.gmra.mxu3 %vm323_vm0, %v304_v55 }
  0x51   : > { %908 = vmatmul.msk.f32.gmra.mxu0 %vm323_vm0, %v287_v12 }
  0x52   : > { %926 = vmatmul.msk.f32.gmra.mxu3 %vm323_vm0, %v305_v59 }
  0x59   : > { %909 = vmatmul.msk.f32.gmra.mxu0 %vm323_vm0, %v288_v13 }
  0x5a   : > { %927 = vmatmul.msk.f32.gmra.mxu3 %vm323_vm0, %v306_v63 }
  0x61   : > { %910 = vmatmul.msk.f32.gmra.mxu0 %vm323_vm0, %v289_v14 }
  0x62   : > { %928 = vmatmul.msk.f32.gmra.mxu3 %vm323_vm0, %v307_v3 }
  0x69   : > { %911 = vmatmul.msk.f32.gmra.mxu0 %vm323_vm0, %v290_v18 }
  0x6a   : > { %929 = vmatmul.msk.f32.gmra.mxu3 %vm323_vm0, %v308_v7 }
  0x71   : > { %912 = vmatmul.msk.f32.gmra.mxu0 %vm323_vm0, %v291_v23  ;;  %v312_v23 = vld [vmem:[%s1183_s10 + $0xf8] sm:$0xff]  ;;  %s1025_s10 = scalar_lea.hbm %s1024_s21, 2 }
  0x72   : > { %930 = vmatmul.msk.f32.gmra.mxu3 %vm323_vm0, %v309_v11  ;;  %p1026_p11 = scmp.ne.s32.totalorder %s1024_s21, %s1025_s10  ;;  %p1031_p1 = scmp.lt.s32.totalorder %s1029_s24, %s1025_s10 }
  0x74   : > { %p1027_p12 = pnand %p1026_p11, %p1154_p5  ;;  %p1032_p2 = por %p1031_p1, %p1030_p0 }
  0x76   : > { %p1028_p13 = pneg %p1027_p12 }
  0x78   : > { %p1033_p3 = pnand %p1032_p2, %p1028_p13 }
  0x79   : > { %913 = vmatmul.msk.f32.gmra.mxu0 %vm323_vm0, %v292_v28 }
  0x7a   : > { %931 = vmatmul.msk.f32.gmra.mxu3 %vm323_vm0, %v310_v15 }
  0x81   : > { %914 = vmatmul.msk.f32.gmra.mxu0 %vm323_vm0, %v293_v32 }
  0x82   : > { %932 = vmatmul.msk.f32.gmra.mxu3 %vm323_vm0, %v311_v19 }
  0x89   : > { %915 = vmatmul.msk.f32.gmra.mxu0 %vm323_vm0, %v294_v35 }
  0x8a   : > { %933 = vmatmul.msk.f32.gmra.mxu3 %vm323_vm0, %v312_v23 }
  0x91   : > { %916 = vmatmul.msk.f32.gmra.mxu0 %vm323_vm0, %v295_v37 }
  0x99   : > { %917 = vmatmul.msk.f32.gmra.mxu0 %vm323_vm0, %v296_v39 }
  0x9e   : > { %v437_v42 = vpop.f32.mrf.mxu0 }
  0x9f   : > { %v438_v44 = vadd.f32 %v1277_v41, %v437_v42 }
  0xa1   : > { %v533_v45 = vmax.f32 %v438_v44, 0.0  ;;  %918 = vmatmul.msk.f32.gmra.mxu0 %vm323_vm0, %v297_v43 }
  0xa3   : > { %601 = vmatmul.f32.vlgmr.msra.gmra.mxu1 %v533_v45 }
  0xa5   : > { %v491_v34 = vpop.f32.mrf.mxu3 }
  0xa6   : > { %v440_v47 = vpop.f32.mrf.mxu0  ;;  %v492_v51 = vadd.f32 %v1277_v41, %v491_v34 }
  0xa7   : > { %v441_v49 = vadd.f32 %v1277_v41, %v440_v47 }
  0xa9   : > { %v534_v50 = vmax.f32 %v441_v49, 0.0  ;;  %919 = vmatmul.msk.f32.gmra.mxu0 %vm323_vm0, %v298_v48 }
  0xab   : > { %604 = vmatmul.f32.gmra.mxu1 %v534_v50 }
  0xad   : > { %v494_v39 = vpop.f32.mrf.mxu3 }
  0xae   : > { %v443_v52 = vpop.f32.mrf.mxu0  ;;  %v495_v55 = vadd.f32 %v1277_v41, %v494_v39 }
  0xaf   : > { %v444_v53 = vadd.f32 %v1277_v41, %v443_v52 }
  0xb1   : > { %v535_v54 = vmax.f32 %v444_v53, 0.0  ;;  %v551_v53 = vmax.f32 %v492_v51, 0.0 }
  0xb3   : > { %607 = vmatmul.f32.gmra.mxu1 %v535_v54 }
  0xb5   : > { %v497_v46 = vpop.f32.mrf.mxu3 }
  0xb6   : > { %v446_v56 = vpop.f32.mrf.mxu0  ;;  %v498_v59 = vadd.f32 %v1277_v41, %v497_v46 }
  0xb7   : > { %v447_v57 = vadd.f32 %v1277_v41, %v446_v56 }
  0xb9   : > { %v536_v58 = vmax.f32 %v447_v57, 0.0  ;;  %v552_v57 = vmax.f32 %v495_v55, 0.0 }
  0xbb   : > { %610 = vmatmul.f32.gmra.mxu1 %v536_v58 }
  0xbd   : > { %v500_v52 = vpop.f32.mrf.mxu3 }
  0xbe   : > { %v449_v60 = vpop.f32.mrf.mxu0  ;;  %v501_v63 = vadd.f32 %v1277_v41, %v500_v52 }
  0xbf   : > { %v450_v61 = vadd.f32 %v1277_v41, %v449_v60  ;;  %v553_v60 = vmax.f32 %v498_v59, 0.0 }
  0xc1   : > { %v537_v62 = vmax.f32 %v450_v61, 0.0 }
  0xc3   : > { %613 = vmatmul.f32.gmra.mxu1 %v537_v62 }
  0xc5   : > { %v503_v56 = vpop.f32.mrf.mxu3 }
  0xc6   : > { %v452_v0 = vpop.f32.mrf.mxu0  ;;  %v504_v3 = vadd.f32 %v1277_v41, %v503_v56 }
  0xc7   : > { %v453_v1 = vadd.f32 %v1277_v41, %v452_v0  ;;  %v554_v0 = vmax.f32 %v501_v63, 0.0 }
  0xc9   : > { %v538_v2 = vmax.f32 %v453_v1, 0.0 }
  0xcb   : > { %616 = vmatmul.f32.gmra.mxu1 %v538_v2 }
  0xcd   : > { %v506_v62 = vpop.f32.mrf.mxu3 }
  0xce   : > { %v455_v4 = vpop.f32.mrf.mxu0 }
  0xcf   : > { %v456_v5 = vadd.f32 %v1277_v41, %v455_v4  ;;  %v555_v4 = vmax.f32 %v504_v3, 0.0 }
  0xd1   : > { %v539_v6 = vmax.f32 %v456_v5, 0.0 }
  0xd3   : > { %619 = vmatmul.f32.gmra.mxu1 %v539_v6  ;;  %v507_v6 = vadd.f32 %v1277_v41, %v506_v62 }
  0xd5   : > { %v509_v2 = vpop.f32.mrf.mxu3 }
  0xd6   : > { %v458_v8 = vpop.f32.mrf.mxu0 }
  0xd7   : > { %v459_v9 = vadd.f32 %v1277_v41, %v458_v8  ;;  %v556_v8 = vmax.f32 %v507_v6, 0.0 }
  0xd9   : > { %v540_v10 = vmax.f32 %v459_v9, 0.0 }
  0xdb   : > { %622 = vmatmul.f32.gmra.mxu1 %v540_v10  ;;  %v510_v10 = vadd.f32 %v1277_v41, %v509_v2 }
  0xdd   : > { %v512_v7 = vpop.f32.mrf.mxu3 }
  0xde   : > { %v461_v12 = vpop.f32.mrf.mxu0 }
  0xdf   : > { %v462_v13 = vadd.f32 %v1277_v41, %v461_v12  ;;  %v557_v12 = vmax.f32 %v510_v10, 0.0 }
  0xe1   : > { %v541_v14 = vmax.f32 %v462_v13, 0.0 }
  0xe3   : > { %625 = vmatmul.f32.gmra.mxu1 %v541_v14  ;;  %v513_v14 = vadd.f32 %v1277_v41, %v512_v7 }
  0xe5   : > { %v515_v11 = vpop.f32.mrf.mxu3  ;;  %v558_v15 = vmax.f32 %v513_v14, 0.0 }
  0xe6   : > { %v464_v16 = vpop.f32.mrf.mxu0 }
  0xe7   : > { %v465_v17 = vadd.f32 %v1277_v41, %v464_v16 }
  0xe9   : > { %v542_v18 = vmax.f32 %v465_v17, 0.0 }
  0xeb   : > { %628 = vmatmul.f32.gmra.mxu1 %v542_v18  ;;  %v516_v18 = vadd.f32 %v1277_v41, %v515_v11 }
  0xed   : > { %v518_v17 = vpop.f32.mrf.mxu3  ;;  %v559_v19 = vmax.f32 %v516_v18, 0.0 }
  0xee   : > { %v467_v20 = vpop.f32.mrf.mxu0 }
  0xef   : > { %v468_v21 = vadd.f32 %v1277_v41, %v467_v20 }
  0xf1   : > { %v543_v22 = vmax.f32 %v468_v21, 0.0 }
  0xf3   : > { %631 = vmatmul.f32.gmra.mxu1 %v543_v22  ;;  %v519_v22 = vadd.f32 %v1277_v41, %v518_v17 }
  0xf5   : > { %v521_v21 = vpop.f32.mrf.mxu3  ;;  %v560_v23 = vmax.f32 %v519_v22, 0.0 }
  0xf6   : > { %v470_v24 = vpop.f32.mrf.mxu0 }
  0xf7   : > { %v471_v25 = vadd.f32 %v1277_v41, %v470_v24 }
  0xf9   : > { %v544_v26 = vmax.f32 %v471_v25, 0.0  ;;  %v522_v25 = vadd.f32 %v1277_v41, %v521_v21 }
  0xfb   : > { %634 = vmatmul.f32.gmra.mxu1 %v544_v26 }
  0xfd   : > { %v524_v26 = vpop.f32.mrf.mxu3 }
  0xfe   : > { %v473_v27 = vpop.f32.mrf.mxu0 }
  0xff   : > { %v474_v28 = vadd.f32 %v1277_v41, %v473_v27  ;;  %v561_v27 = vmax.f32 %v522_v25, 0.0 }
 0x101   : > { %v545_v29 = vmax.f32 %v474_v28, 0.0 }
 0x103   : > { %637 = vmatmul.f32.gmra.mxu1 %v545_v29  ;;  %v525_v29 = vadd.f32 %v1277_v41, %v524_v26 }
 0x106   : > { %v476_v30 = vpop.f32.mrf.mxu0 }
 0x107   : > { %v477_v31 = vadd.f32 %v1277_v41, %v476_v30  ;;  %v527_v30 = vpop.f32.mrf.mxu3 }
 0x109   : > { %v546_v32 = vmax.f32 %v477_v31, 0.0  ;;  %v562_v31 = vmax.f32 %v525_v29, 0.0 }
 0x10b   : > { %640 = vmatmul.f32.gmra.mxu1 %v546_v32 }
 0x10e   : > { %v479_v33 = vpop.f32.mrf.mxu0 }
 0x10f   : > { %v480_v35 = vadd.f32 %v1277_v41, %v479_v33  ;;  %v528_v33 = vadd.f32 %v1277_v41, %v527_v30 }
 0x111   : > { %v547_v36 = vmax.f32 %v480_v35, 0.0  ;;  %v563_v34 = vmax.f32 %v528_v33, 0.0 }
 0x113   : > { %643 = vmatmul.f32.gmra.mxu1 %v547_v36  ;;  %v530_v36 = vpop.f32.mrf.mxu3 }
 0x116   : > { %v482_v37 = vpop.f32.mrf.mxu0 }
 0x117   : > { %v483_v38 = vadd.f32 %v1277_v41, %v482_v37  ;;  %v531_v37 = vadd.f32 %v1277_v41, %v530_v36 }
 0x119   : > { %v548_v40 = vmax.f32 %v483_v38, 0.0  ;;  %v1356_v38 = vld [vmem:[%s1459_s4] ss:$0 sm:$0xff]  ;;  %v564_v39 = vmax.f32 %v531_v37, 0.0 }
 0x11a   : > { %v730_v37 = vld [vmem:[%s1460_s5] sm:$0x1] }
 0x11b   : > { %646 = vmatmul.f32.gmra.mxu1 %v548_v40 }
 0x11e   : > { %v485_v42 = vpop.f32.mrf.mxu0 }
 0x11f   : > { %v486_v43 = vadd.f32 %v1277_v41, %v485_v42 }
 0x120   : > { %v1322_v44 = vpop.f32.mrf.mxu1 }
 0x121   : > { %v549_v45 = vmax.f32 %v486_v43, 0.0 }
 0x123   : > { %649 = vmatmul.f32.gmra.mxu1 %v549_v45 }
 0x126   : > { %v488_v47 = vpop.f32.mrf.mxu0 }
 0x127   : > { %v489_v48 = vadd.f32 %v1277_v41, %v488_v47 }
 0x128   : > { %v1325_v49 = vpop.f32.mrf.mxu1 }
 0x129   : > { %v550_v50 = vmax.f32 %v489_v48, 0.0 }
 0x12b   : > { %652 = vmatmul.f32.vlgmr.msra.gmra.mxu2 %v550_v50 }
 0x130   : > { %v1328_v54 = vpop.f32.mrf.mxu1 }
 0x133   : > { %655 = vmatmul.f32.gmra.mxu2 %v551_v53 }
 0x138   : > { %v1331_v58 = vpop.f32.mrf.mxu1 }
 0x139   : > { %v612_v11 = vadd.f32 %v1356_v38, %v1331_v58 }
 0x13b   : > { %658 = vmatmul.f32.gmra.mxu2 %v552_v57 }
 0x140   : > { %v1334_v61 = vpop.f32.mrf.mxu1 }
 0x143   : > { %661 = vmatmul.f32.gmra.mxu2 %v553_v60 }
 0x148   : > { %v1337_v1 = vpop.f32.mrf.mxu1 }
 0x149   : > { %v618_v6 = vadd.f32 %v1356_v38, %v1337_v1  ;;  %v606_v1 = vadd.f32 %v1356_v38, %v1325_v49 }
 0x14b   : > { %664 = vmatmul.f32.gmra.mxu2 %v554_v0  ;;  %v703_v10 = vmax.f32 %v618_v6, 0.0 }
 0x150   : > { %v1340_v5 = vpop.f32.mrf.mxu1 }
 0x151   : > { %v621_v2 = vadd.f32 %v1356_v38, %v1340_v5  ;;  %v609_v5 = vadd.f32 %v1356_v38, %v1328_v54 }
 0x153   : > { %667 = vmatmul.f32.gmra.mxu2 %v555_v4  ;;  %v704_v7 = vmax.f32 %v621_v2, 0.0 }
 0x158   : > { %v1343_v9 = vpop.f32.mrf.mxu1 }
 0x159   : > { %v624_v63 = vadd.f32 %v1356_v38, %v1343_v9 }
 0x15b   : > { %670 = vmatmul.f32.gmra.mxu2 %v556_v8  ;;  %v705_v3 = vmax.f32 %v624_v63, 0.0  ;;  %v615_v8 = vadd.f32 %v1356_v38, %v1334_v61  ;;  %v603_v61 = vadd.f32 %v1356_v38, %v1322_v44 }
 0x15d   : > { %v698_v58 = vmax.f32 %v603_v61, 0.0 }
 0x160   : > { %v626_v13 = vpop.f32.mrf.mxu1 }
 0x161   : > { %v627_v59 = vadd.f32 %v1356_v38, %v626_v13  ;;  %v701_v13 = vmax.f32 %v612_v11, 0.0 }
 0x163   : > { %673 = vmatmul.f32.gmra.mxu2 %v557_v12  ;;  %v706_v0 = vmax.f32 %v627_v59, 0.0  ;;  %v702_v12 = vmax.f32 %v615_v8, 0.0 }
 0x168   : > { %v629_v16 = vpop.f32.mrf.mxu1 }
 0x169   : > { %v630_v56 = vadd.f32 %v1356_v38, %v629_v16  ;;  %v699_v16 = vmax.f32 %v606_v1, 0.0 }
 0x16b   : > { %676 = vmatmul.f32.gmra.mxu2 %v558_v15  ;;  %v707_v60 = vmax.f32 %v630_v56, 0.0  ;;  %v700_v15 = vmax.f32 %v609_v5, 0.0 }
 0x170   : > { %v632_v20 = vpop.f32.mrf.mxu1 }
 0x171   : > { %v633_v52 = vadd.f32 %v1356_v38, %v632_v20 }
 0x173   : > { %679 = vmatmul.f32.gmra.mxu2 %v559_v19  ;;  %v708_v57 = vmax.f32 %v633_v52, 0.0 }
 0x178   : > { %v635_v24 = vpop.f32.mrf.mxu1 }
 0x179   : > { %v636_v50 = vadd.f32 %v1356_v38, %v635_v24 }
 0x17b   : > { %682 = vmatmul.f32.gmra.mxu2 %v560_v23  ;;  %v709_v53 = vmax.f32 %v636_v50, 0.0 }
 0x180   : > { %v638_v28 = vpop.f32.mrf.mxu1 }
 0x181   : > { %v639_v41 = vadd.f32 %v1356_v38, %v638_v28 }
 0x183   : > { %685 = vmatmul.f32.gmra.mxu2 %v561_v27  ;;  %v710_v51 = vmax.f32 %v639_v41, 0.0 }
 0x188   : > { %v641_v32 = vpop.f32.mrf.mxu1 }
 0x189   : > { %v642_v46 = vadd.f32 %v1356_v38, %v641_v32 }
 0x18b   : > { %688 = vmatmul.f32.gmra.mxu2 %v562_v31  ;;  %v711_v48 = vmax.f32 %v642_v46, 0.0 }
 0x190   : > { %v644_v35 = vpop.f32.mrf.mxu1 }
 0x191   : > { %v645_v43 = vadd.f32 %v1356_v38, %v644_v35 }
 0x193   : > { %691 = vmatmul.f32.gmra.mxu2 %v563_v34  ;;  %v712_v47 = vmax.f32 %v645_v43, 0.0 }
 0x198   : > { %v647_v40 = vpop.f32.mrf.mxu1 }
 0x199   : > { %v648_v42 = vadd.f32 %v1356_v38, %v647_v40 }
 0x19b   : > { %v713_v45 = vmax.f32 %v648_v42, 0.0  ;;  %694 = vmatmul.f32.gmra.mxu2 %v564_v39 }
 0x19d   : > { %733 = vmatpush.xpose.msrb.mxu2 %v713_v45 }
 0x1a1   : > { %734 = vmatpush.xpose.msrb.mxu2 %v712_v47 }
 0x1a5   : > { %735 = vmatpush.xpose.msrb.mxu2 %v711_v48 }
 0x1a9   : > { %736 = vmatpush.xpose.msrb.mxu2 %v710_v51 }
 0x1ad   : > { %737 = vmatpush.xpose.msrb.mxu2 %v709_v53 }
 0x1ae   : > { %v1364_v55 = vpop.f32.mrf.mxu2 }
 0x1b1   : > { %738 = vmatpush.xpose.msrb.mxu2 %v708_v57  ;;  %v654_v57 = vadd.f32 %v1356_v38, %v1364_v55 }
 0x1b5   : > { %739 = vmatpush.xpose.msrb.mxu2 %v707_v60  ;;  %v650_v60 = vpop.f32.mrf.mxu1 }
 0x1b6   : > { %v1368_v62 = vpop.f32.mrf.mxu2  ;;  %v651_v63 = vadd.f32 %v1356_v38, %v650_v60 }
 0x1b7   : > { %v657_v53 = vadd.f32 %v1356_v38, %v1368_v62 }
 0x1b8   : > { %v714_v2 = vmax.f32 %v651_v63, 0.0 }
 0x1b9   : > { %740 = vmatpush.xpose.msrb.mxu2 %v706_v0  ;;  %v716_v59 = vmax.f32 %v657_v53, 0.0  ;;  %v715_v0 = vmax.f32 %v654_v57, 0.0 }
 0x1bd   : > { %741 = vmatpush.xpose.msrb.mxu2 %v705_v3  ;;  %v732_v3 = vstv %s731_s25 }
 0x1be   : > { %v1374_v4 = vpop.f32.mrf.mxu2 }
 0x1bf   : > { %v660_v51 = vadd.f32 %v1356_v38, %v1374_v4 }
 0x1c1   : > { %742 = vmatpush.xpose.msrb.mxu2 %v704_v7  ;;  %v717_v56 = vmax.f32 %v660_v51, 0.0 }
 0x1c5   : > { %743 = vmatpush.xpose.msrb.mxu2 %v703_v10 }
 0x1c6   : > { %v662_v9 = vpop.f32.mrf.mxu2 }
 0x1c7   : > { %v663_v48 = vadd.f32 %v1356_v38, %v662_v9 }
 0x1c9   : > { %744 = vmatpush.xpose.msrb.mxu2 %v702_v12  ;;  %v718_v52 = vmax.f32 %v663_v48, 0.0 }
 0x1cd   : > { %745 = vmatpush.xpose.msrb.mxu2 %v701_v13 }
 0x1ce   : > { %v665_v14 = vpop.f32.mrf.mxu2 }
 0x1cf   : > { %v666_v47 = vadd.f32 %v1356_v38, %v665_v14 }
 0x1d1   : > { %746 = vmatpush.xpose.msrb.mxu2 %v700_v15  ;;  %v719_v50 = vmax.f32 %v666_v47, 0.0 }
 0x1d5   : > { %747 = vmatpush.xpose.msrb.mxu2 %v699_v16 }
 0x1d6   : > { %v668_v17 = vpop.f32.mrf.mxu2 }
 0x1d7   : > { %v669_v45 = vadd.f32 %v1356_v38, %v668_v17 }
 0x1d9   : > { %748 = vmatpush.xpose.msrb.mxu2 %v698_v58  ;;  %v720_v41 = vmax.f32 %v669_v45, 0.0 }
 0x1dc   : > { %749 = vmatmul.f32.vlgmr.msrb.gmra.mxu2 %v730_v37 }
 0x1de   : > { %v671_v18 = vpop.f32.mrf.mxu2 }
 0x1df   : > { %v672_v42 = vadd.f32 %v1356_v38, %v671_v18 }
 0x1e1   : > { %v721_v46 = vmax.f32 %v672_v42, 0.0 }
 0x1e6   : > { %v674_v19 = vpop.f32.mrf.mxu2 }
 0x1e7   : > { %v675_v39 = vadd.f32 %v1356_v38, %v674_v19 }
 0x1e9   : > { %v722_v43 = vmax.f32 %v675_v39, 0.0 }
 0x1ee   : > { %v677_v20 = vpop.f32.mrf.mxu2 }
 0x1ef   : > { %v678_v35 = vadd.f32 %v1356_v38, %v677_v20 }
 0x1f1   : > { %v723_v40 = vmax.f32 %v678_v35, 0.0 }
 0x1f6   : > { %v680_v54 = vpop.f32.mrf.mxu2 }
 0x1f7   : > { %v681_v33 = vadd.f32 %v1356_v38, %v680_v54 }
 0x1f9   : > { %v724_v36 = vmax.f32 %v681_v33, 0.0 }
 0x1fe   : > { %v683_v21 = vpop.f32.mrf.mxu2 }
 0x1ff   : > { %v684_v31 = vadd.f32 %v1356_v38, %v683_v21 }
 0x201   : > { %v725_v34 = vmax.f32 %v684_v31, 0.0 }
 0x206   : > { %v686_v22 = vpop.f32.mrf.mxu2 }
 0x207   : > { %v687_v29 = vadd.f32 %v1356_v38, %v686_v22 }
 0x209   : > { %v726_v32 = vmax.f32 %v687_v29, 0.0 }
 0x20e   : > { %v689_v23 = vpop.f32.mrf.mxu2 }
 0x20f   : > { %v690_v44 = vadd.f32 %v1356_v38, %v689_v23 }
 0x211   : > { %v727_v30 = vmax.f32 %v690_v44, 0.0 }
 0x216   : > { %v692_v24 = vpop.f32.mrf.mxu2 }
 0x217   : > { %v693_v26 = vadd.f32 %v1356_v38, %v692_v24  ;;  %v815_v24 = vlaneseq }
 0x219   : > { %v728_v28 = vmax.f32 %v693_v26, 0.0  ;;  %vm817_vm10 = vcmp.lt.s32.totalorder %v815_v24, 256 }
 0x21e   : > { %v695_v25 = vpop.f32.mrf.mxu2 }
 0x21f   : > { %v696_v49 = vadd.f32 %v1356_v38, %v695_v25 }
 0x221   : > { %v729_v27 = vmax.f32 %v696_v49, 0.0 }
 0x223   : > { %753 = vmatpush.xpose.msrb.mxu3 %v729_v27 }
 0x227   : > { %754 = vmatpush.xpose.msrb.mxu3 %v728_v28 }
 0x22b   : > { %755 = vmatpush.xpose.msrb.mxu3 %v727_v30 }
 0x22f   : > { %756 = vmatpush.xpose.msrb.mxu3 %v726_v32 }
 0x233   : > { %757 = vmatpush.xpose.msrb.mxu3 %v725_v34 }
 0x237   : > { %758 = vmatpush.xpose.msrb.mxu3 %v724_v36 }
 0x23b   : > { %759 = vmatpush.xpose.msrb.mxu3 %v723_v40 }
 0x23f   : > { %760 = vmatpush.xpose.msrb.mxu3 %v722_v43 }
 0x243   : > { %761 = vmatpush.xpose.msrb.mxu3 %v721_v46 }
 0x247   : > { %762 = vmatpush.xpose.msrb.mxu3 %v720_v41 }
 0x24b   : > { %763 = vmatpush.xpose.msrb.mxu3 %v719_v50 }
 0x24f   : > { %764 = vmatpush.xpose.msrb.mxu3 %v718_v52 }
 0x253   : > { %765 = vmatpush.xpose.msrb.mxu3 %v717_v56 }
 0x257   : > { %766 = vmatpush.xpose.msrb.mxu3 %v716_v59 }
 0x25b   : > { %767 = vmatpush.xpose.msrb.mxu3 %v715_v0 }
 0x25f   : > { %768 = vmatpush.xpose.msrb.mxu3 %v714_v2  ;;  %v750_v4 = vpop.f32.mrf.mxu2 }
 0x260   : > { %v751_v6 = vadd.f32 %v750_v4, %v732_v3 }
 0x262   : > { %769 = vmatmul.f32.vlgmr.msrb.gmra.mxu3 %v730_v37  ;;  %v773_v62 = vsub.f32 0.0, %v751_v6 }
 0x264   : > { %v775_v7 = vmul.f32 1.442695, %v773_v62 }
 0x266   : > { %1001 = vpow2.f32 %v775_v7 }
 0x26c   : > { %v1002_v8 = vpop.eup %1001 }
 0x26d   : > { %v779_v9 = vadd.f32 1.0, %v1002_v8 }
 0x26f   : > { %1003 = vrcp.f32 %v779_v9  ;;  %vm786_vm1 = vweird.f32 %v779_v9  ;;  %v792_v18 = vand.u32 2147483648, %v779_v9  ;;  %v790_v54 = vand.u32 2147483647, %v779_v9 }
 0x271   : > { %v793_v25 = vor.u32 1.1754944e-38, %v792_v18  ;;  %vm791_vm7 = vcmp.eq.f32.partialorder %v790_v54, 8.507059e+37 }
 0x275   : > { %v1004_v12 = vpop.eup %1003 }
 0x276   : > { %v782_v14 = vmul.f32 %v1004_v12, %v779_v9  ;;  %vm787_vm2 = vweird.f32 %v1004_v12 }
 0x277   : > { %vm1416_vm4 = vmor %vm786_vm1, %vm787_vm2 }
 0x278   : > { %v783_v1 = vsub.f32 1.0, %v782_v14 }
 0x27a   : > { %v784_v61 = vmul.f32 %v1004_v12, %v783_v1 }
 0x27c   : > { %v785_v58 = vadd.f32 %v1004_v12, %v784_v61 }
 0x27e   : > { %v789_v26 = vsel %vm1416_vm4, %v1004_v12, %v785_v58 }
 0x27f   : > { %v794_v29 = vsel %vm791_vm7, %v793_v25, %v789_v26 }
 0x2e5   : > { %v770_v55 = vpop.f32.mrf.mxu3 }
 0x2e6   : > { %v771_v10 = vadd.f32 %v770_v55, %v732_v3 }
 0x2e8   : > { %v774_v11 = vsub.f32 0.0, %v771_v10 }
 0x2ea   : > { %v777_v38 = vmul.f32 1.442695, %v774_v11 }
 0x2ec   : > { %1005 = vpow2.f32 %v777_v38 }
 0x2f2   : > { %v1006_v5 = vpop.eup %1005 }
 0x2f3   : > { %v780_v13 = vadd.f32 1.0, %v1006_v5 }
 0x2f5   : > { %1007 = vrcp.f32 %v780_v13  ;;  %v806_v19 = vand.u32 2147483648, %v780_v13  ;;  %v804_v21 = vand.u32 2147483647, %v780_v13  ;;  %vm800_vm5 = vweird.f32 %v780_v13 }
 0x2f7   : > { %v807_v49 = vor.u32 1.1754944e-38, %v806_v19  ;;  %vm805_vm8 = vcmp.eq.f32.partialorder %v804_v21, 8.507059e+37 }
 0x2fb   : > { %v1008_v15 = vpop.eup %1007 }
 0x2fc   : > { %v796_v16 = vmul.f32 %v1008_v15, %v780_v13  ;;  %vm801_vm3 = vweird.f32 %v1008_v15 }
 0x2fd   : > { %vm802_vm6 = vmor %vm800_vm5, %vm801_vm3 }
 0x2fe   : > { %v797_v17 = vsub.f32 1.0, %v796_v16 }
 0x300   : > { %v798_v20 = vmul.f32 %v1008_v15, %v797_v17 }
 0x302   : > { %v799_v23 = vadd.f32 %v1008_v15, %v798_v20 }
 0x304   : > { %v803_v27 = vsel %vm802_vm6, %v1008_v15, %v799_v23 }
 0x305   : > { %v808_v44 = vsel %vm805_vm8, %v807_v49, %v803_v27 }
 0x306   : > { %v811_v28 = vrot.slane %v808_v44, 7 }
 0x308   : > { %v813_v30 = vsel %vm812_vm9, %v794_v29, %v811_v28 }
 0x309   : > { %819 = vst.msk [vmem:[%s273_s6] sm:$0x3] %vm817_vm10, %v813_v30 }
 0x30a   : > { %1036 = shalt.err (!%p1033_p3)
}
 0x30b   : > { %960 = dma.vmem_to_hbm [thread:$0]  (%p1154_p5), %s834_s18, 32, %s836_s19, %s821_s20  }
 0x30c PF: > { %p966_p4 = scmp.ge.s32.totalorder %s1071_s29, 2  ;;  %s847_s30 = sand.u32 1, %s1059_s26  }
 0x30d   : > { %s848_s14 = scalar_lea.sflag [#allocation4], %s847_s30 }
 0x30e   : > { %p963_p7 = pnand %p966_p4, %p1158_p6 }
 0x310   : > { %p964_p8 = pneg %p963_p7 }
 0x312   : > { %1054 = dma.done.wait (%p964_p8), %s848_s14, 32  }
 0x313   : > { %1056 = vsyncadd (%p964_p8), %s848_s14, 4294967264  ;;  %p18_p9 = scmp.ge.s32.totalorder %s1141_s8, 6   ;;  %s1467_s26 = smov %s1063_s27 }
 0x314   : > { %s1468_s27 = smov %s1067_s28  ;;  %s1469_s28 = smov %s1152_s11 }
 0x315   : > { %s1470_s29 = smov %s1141_s8  ;;  %20 = sbr.rel (!%p18_p9) target bundleno = 5 (0x5), region = 83 }
 0x31a   :  { %854 = vsyncpa [#allocation4], 1 }
 0x31b   :  { %856 = vsyncpa [#allocation4 + $0x1], 1 }

</bundles_post_ra>
